<compile_context>
chip_gen: v7x
topology: tpu7x:2x2x1
jax: 0.10.0
libtpu: 0.0.40
codegen_flags: <defaults>
</compile_context>

<pallas_src>
import functools

import jax
import jax.numpy as jnp
from jax.experimental import pallas as pl
from jax.experimental.pallas import tpu as pltpu

LANE = 128      # TPU lane width  (last dim)
SUBLANE = 8     # TPU sublane width (second-to-last dim)

# Above this packed-weight-slab size we switch from the grid-less fully-fused
# call to the layer-streamed grid (keeps VMEM use independent of depth).
_FUSED_SLAB_LIMIT_BYTES = 8 << 20


def _round_up(x, m):
    return (x + m - 1) // m * m


def _mlp_fused_kernel(x_ref, w_ref, b_ref, o_ref, *, num_layers, in_f, out_f):
    """Whole MLP in one grid-less call; activations never leave vregs/VMEM.

    x_ref: (B, in_f)      f32   (un-padded -- no wrapper pad op)
    w_ref: (L, PAD, PAD)  bf16  (zero-padded, pre-transposed)
    b_ref: (L, 1, PAD)    f32   (zero-padded)
    o_ref: (B, out_f)     f32   (un-padded -- no wrapper slice op)
    """
    # Layer 0 contracts only over the real input features.  Zero-padded weight
    # columns + zero bias => padded activation lanes are exactly tanh(0)=0 and
    # stay inert through all later layers.
    h = jnp.dot(x_ref[...].astype(jnp.bfloat16), w_ref[0][:in_f, :],
                preferred_element_type=jnp.float32)
    h = jnp.tanh(h + b_ref[0])
    for l in range(1, num_layers):                      # statically unrolled
        h = jnp.dot(h.astype(jnp.bfloat16), w_ref[l],
                    preferred_element_type=jnp.float32)
        h = jnp.tanh(h + b_ref[l])
    o_ref[...] = h[:, :out_f].astype(o_ref.dtype)


def _mlp_streamed_kernel(x_ref, w_ref, b_ref, o_ref, h_ref, *, in_f, out_f):
    """One layer per grid step; weight tiles are streamed (double-buffered by
    the BlockSpec pipeline) while the activation lives in a VMEM scratch.

    x_ref: (B, in_f) f32     w_ref: (1, PAD, PAD) bf16   b_ref: (1, 1, PAD) f32
    o_ref: (B, out_f) f32    h_ref: (B, PAD) f32 scratch (persists across grid)
    """
    l = pl.program_id(0)
    last = pl.num_programs(0) - 1

    @pl.when(l == 0)
    def _():
        h = jnp.dot(x_ref[...].astype(jnp.bfloat16), w_ref[0][:in_f, :],
                    preferred_element_type=jnp.float32)
        h_ref[...] = jnp.tanh(h + b_ref[0])

    @pl.when(l > 0)
    def _():
        h = jnp.dot(h_ref[...].astype(jnp.bfloat16), w_ref[0],
                    preferred_element_type=jnp.float32)
        h_ref[...] = jnp.tanh(h + b_ref[0])

    @pl.when(l == last)
    def _():
        o_ref[...] = h_ref[:, :out_f].astype(o_ref.dtype)


def init_params(layers, key, dtype=jnp.float32):
    """Deterministic init mirroring nn.Linear default (uniform +/- 1/sqrt(in)).
    Weights are stored already transposed: (in_f, out_f)."""
    params = []
    for i in range(len(layers) - 1):
        in_f, out_f = layers[i], layers[i + 1]
        key, kw, kb = jax.random.split(key, 3)
        bound = 1.0 / (in_f ** 0.5)
        w = jax.random.uniform(kw, (in_f, out_f), dtype, -bound, bound)
        b = jax.random.uniform(kb, (1, out_f), dtype, -bound, bound)
        params.append((w, b))
    return params


def pack_params(params, layers, weight_dtype=jnp.bfloat16):
    """Zero-pad every layer to a common (PAD, PAD)/(1, PAD) and stack into
    single contiguous slabs.  Weights in bf16 (native MXU path, half the DMA
    bytes); biases in f32 (added to the f32 accumulator).  Zero padding is
    mathematically inert because tanh(0) == 0."""
    pad = _round_up(max(max(layers), LANE), LANE)
    ws, bs = [], []
    for (w, b) in params:
        in_f, out_f = w.shape
        w_p = jnp.zeros((pad, pad), weight_dtype).at[:in_f, :out_f].set(
            w.astype(weight_dtype))
        b_p = jnp.zeros((1, pad), jnp.float32).at[:, :out_f].set(
            b.reshape(1, -1).astype(jnp.float32))
        ws.append(w_p)
        bs.append(b_p)
    return jnp.stack(ws), jnp.stack(bs), pad


def _vmem_limit_bytes(working_set_bytes):
    """Raise the scoped-VMEM limit only when actually needed (v5e default
    scope is ~16 MiB); stay below v7x's 64 MiB physical VMEM."""
    need = 2 * int(working_set_bytes) + (2 << 20)
    if need <= (16 << 20):
        return None
    return min(need, 60 << 20)


def nn_forward(x, w_packed, b_packed, out_features, *, mode="auto"):
    """Forward pass of the MLP.  mode in {"auto", "fused", "streamed"}."""
    B, in_f = x.shape
    L, pad, _ = w_packed.shape
    out_dtype = x.dtype

    slab_bytes = w_packed.size * w_packed.dtype.itemsize
    if mode == "auto":
        mode = "fused" if slab_bytes <= _FUSED_SLAB_LIMIT_BYTES else "streamed"

    out_bytes = B * out_features * out_dtype.itemsize
    cost = pl.CostEstimate(
        flops=int(2 * L * B * pad * pad),
        transcendentals=int(L * B * pad),
        bytes_accessed=int(x.nbytes + w_packed.nbytes + b_packed.nbytes
                           + out_bytes),
    )
    act_bytes = B * pad * 4

    if mode == "fused":
        working = (x.nbytes + w_packed.nbytes + b_packed.nbytes
                   + act_bytes + out_bytes)
        kernel = functools.partial(_mlp_fused_kernel, num_layers=L,
                                   in_f=in_f, out_f=out_features)
        return pl.pallas_call(
            kernel,
            out_shape=jax.ShapeDtypeStruct((B, out_features), out_dtype),
            in_specs=[pl.BlockSpec(memory_space=pltpu.MemorySpace.VMEM)] * 3,
            out_specs=pl.BlockSpec(memory_space=pltpu.MemorySpace.VMEM),
            cost_estimate=cost,
            compiler_params=pltpu.CompilerParams(
                vmem_limit_bytes=_vmem_limit_bytes(working)),
        )(x, w_packed, b_packed)

    # Layer-streamed grid: VMEM use is ~2 weight tiles + activation scratch,
    # independent of depth; weight DMA overlaps the previous layer's matmul.
    per_layer = pad * pad * w_packed.dtype.itemsize + pad * 4
    working = x.nbytes + 2 * per_layer + act_bytes + out_bytes
    kernel = functools.partial(_mlp_streamed_kernel,
                               in_f=in_f, out_f=out_features)
    return pl.pallas_call(
        kernel,
        out_shape=jax.ShapeDtypeStruct((B, out_features), out_dtype),
        grid_spec=pltpu.PrefetchScalarGridSpec(
            num_scalar_prefetch=0,
            grid=(L,),
            in_specs=[
                pl.BlockSpec((B, in_f), lambda l: (0, 0)),      # x (resident)
                pl.BlockSpec((1, pad, pad), lambda l: (l, 0, 0)),  # W_l
                pl.BlockSpec((1, 1, pad), lambda l: (l, 0, 0)),    # b_l
            ],
            out_specs=pl.BlockSpec((B, out_features), lambda l: (0, 0)),
            scratch_shapes=[pltpu.VMEM((B, pad), jnp.float32)],
        ),
        cost_estimate=cost,
        compiler_params=pltpu.CompilerParams(
            dimension_semantics=("arbitrary",),
            vmem_limit_bytes=_vmem_limit_bytes(working)),
    )(x, w_packed, b_packed)


if __name__ == "__main__":
    # Small shapes consistent with the module: layers = [32, 64, 64, 16]
    layers = [32, 64, 64, 16]
    batch = 8
    # TODO(synk): for real deployments batch many inputs per call (>=128 rows)
    # and add a parallel batch grid axis on v7x (2 TCs); at B=8 the kernel is
    # launch/latency bound regardless of kernel-internal choices.

    key = jax.random.PRNGKey(0)
    key, kx = jax.random.split(key)
    x = jax.random.normal(kx, (batch, layers[0]), dtype=jnp.float32)

    params = init_params(layers, key)
    w_packed, b_packed, _ = pack_params(params, layers)

    # Pure-JAX reference using the same bf16 weight/activation quantization the
    # kernel uses (accumulation, bias-add and tanh in f32, like the MXU path).
    ref = x
    for (w, b) in params:
        w_q = w.astype(jnp.bfloat16).astype(jnp.float32)
        ref = jnp.tanh(ref.astype(jnp.bfloat16).astype(jnp.float32) @ w_q + b)

    out_fused = jax.block_until_ready(
        nn_forward(x, w_packed, b_packed, layers[-1], mode="fused"))
    out_streamed = jax.block_until_ready(
        nn_forward(x, w_packed, b_packed, layers[-1], mode="streamed"))

    assert out_fused.shape == (batch, layers[-1])
    assert out_streamed.shape == (batch, layers[-1])
    assert jnp.allclose(out_fused, ref, atol=1e-3, rtol=1e-3), \
        "fused kernel mismatch vs reference"
    assert jnp.allclose(out_streamed, ref, atol=1e-3, rtol=1e-3), \
        "streamed kernel mismatch vs reference"
    assert jnp.allclose(out_fused, out_streamed, atol=1e-4, rtol=1e-4), \
        "fused vs streamed mismatch"

    # TODO(synk): the SGD optimizer / MSELoss training machinery of the
    # PyTorch module is not part of forward() and is not implemented here.

    print("KERNEL_OK")
</pallas_src>

<mosaic_0001>
module attributes {stable_mosaic.version = 11 : i64} {
  func.func @_mlp_fused_kernel(%arg0: memref<8x32xf32, #tpu.memory_space<vmem>>, %arg1: memref<3x128x128xbf16, #tpu.memory_space<vmem>>, %arg2: memref<3x1x128xf32, #tpu.memory_space<vmem>>, %arg3: memref<8x16xf32, #tpu.memory_space<vmem>>) attributes {dimension_semantics = [], scalar_prefetch = 0 : i64, scratch_operands = 0 : i64, tpu.core_type = #tpu.core_type<tc>} {
    %c0 = arith.constant 0 : index
    %c0_0 = arith.constant 0 : index
    %0 = vector.load %arg0[%c0, %c0_0] : memref<8x32xf32, #tpu.memory_space<vmem>>, vector<8x32xf32>
    %1 = arith.truncf %0 : vector<8x32xf32> to vector<8x32xbf16>
    %c0_1 = arith.constant 0 : index
    %c0_2 = arith.constant 0 : index
    %c0_3 = arith.constant 0 : index
    %2 = vector.load %arg1[%c0_1, %c0_2, %c0_3] : memref<3x128x128xbf16, #tpu.memory_space<vmem>>, vector<1x128x128xbf16>
    %3 = vector.shape_cast %2 : vector<1x128x128xbf16> to vector<128x128xbf16>
    %4 = vector.extract_strided_slice %3 {offsets = [0, 0], sizes = [32, 128], strides = [1, 1]} : vector<128x128xbf16> to vector<32x128xbf16>
    %cst = arith.constant dense<0.000000e+00> : vector<8x128xf32>
    %5 = tpu.matmul %1, %4, %cst {dimension_numbers = #tpu.dot_dimension_numbers<[1], [0], [0], [1], [0, 0, 1, 1], [], []>} : vector<8x32xbf16>, vector<32x128xbf16>, vector<8x128xf32> -> vector<8x128xf32>
    %c0_4 = arith.constant 0 : index
    %c0_5 = arith.constant 0 : index
    %c0_6 = arith.constant 0 : index
    %6 = vector.load %arg2[%c0_4, %c0_5, %c0_6] : memref<3x1x128xf32, #tpu.memory_space<vmem>>, vector<1x1x128xf32>
    %7 = vector.shape_cast %6 : vector<1x1x128xf32> to vector<1x128xf32>
    %8 = vector.broadcast %7 : vector<1x128xf32> to vector<8x128xf32>
    %9 = arith.addf %5, %8 : vector<8x128xf32>
    %10 = math.tanh %9 : vector<8x128xf32>
    %11 = arith.truncf %10 : vector<8x128xf32> to vector<8x128xbf16>
    %c1 = arith.constant 1 : index
    %c0_7 = arith.constant 0 : index
    %c0_8 = arith.constant 0 : index
    %12 = vector.load %arg1[%c1, %c0_7, %c0_8] : memref<3x128x128xbf16, #tpu.memory_space<vmem>>, vector<1x128x128xbf16>
    %13 = vector.shape_cast %12 : vector<1x128x128xbf16> to vector<128x128xbf16>
    %cst_9 = arith.constant dense<0.000000e+00> : vector<8x128xf32>
    %14 = tpu.matmul %11, %13, %cst_9 {dimension_numbers = #tpu.dot_dimension_numbers<[1], [0], [0], [1], [0, 0, 1, 1], [], []>} : vector<8x128xbf16>, vector<128x128xbf16>, vector<8x128xf32> -> vector<8x128xf32>
    %c1_10 = arith.constant 1 : index
    %c0_11 = arith.constant 0 : index
    %c0_12 = arith.constant 0 : index
    %15 = vector.load %arg2[%c1_10, %c0_11, %c0_12] : memref<3x1x128xf32, #tpu.memory_space<vmem>>, vector<1x1x128xf32>
    %16 = vector.shape_cast %15 : vector<1x1x128xf32> to vector<1x128xf32>
    %17 = vector.broadcast %16 : vector<1x128xf32> to vector<8x128xf32>
    %18 = arith.addf %14, %17 : vector<8x128xf32>
    %19 = math.tanh %18 : vector<8x128xf32>
    %20 = arith.truncf %19 : vector<8x128xf32> to vector<8x128xbf16>
    %c2 = arith.constant 2 : index
    %c0_13 = arith.constant 0 : index
    %c0_14 = arith.constant 0 : index
    %21 = vector.load %arg1[%c2, %c0_13, %c0_14] : memref<3x128x128xbf16, #tpu.memory_space<vmem>>, vector<1x128x128xbf16>
    %22 = vector.shape_cast %21 : vector<1x128x128xbf16> to vector<128x128xbf16>
    %cst_15 = arith.constant dense<0.000000e+00> : vector<8x128xf32>
    %23 = tpu.matmul %20, %22, %cst_15 {dimension_numbers = #tpu.dot_dimension_numbers<[1], [0], [0], [1], [0, 0, 1, 1], [], []>} : vector<8x128xbf16>, vector<128x128xbf16>, vector<8x128xf32> -> vector<8x128xf32>
    %c2_16 = arith.constant 2 : index
    %c0_17 = arith.constant 0 : index
    %c0_18 = arith.constant 0 : index
    %24 = vector.load %arg2[%c2_16, %c0_17, %c0_18] : memref<3x1x128xf32, #tpu.memory_space<vmem>>, vector<1x1x128xf32>
    %25 = vector.shape_cast %24 : vector<1x1x128xf32> to vector<1x128xf32>
    %26 = vector.broadcast %25 : vector<1x128xf32> to vector<8x128xf32>
    %27 = arith.addf %23, %26 : vector<8x128xf32>
    %28 = math.tanh %27 : vector<8x128xf32>
    %29 = vector.extract_strided_slice %28 {offsets = [0, 0], sizes = [8, 16], strides = [1, 1]} : vector<8x128xf32> to vector<8x16xf32>
    %c0_19 = arith.constant 0 : index
    %c0_20 = arith.constant 0 : index
    %30 = vector.load %arg3[%c0_19, %c0_20] : memref<8x16xf32, #tpu.memory_space<vmem>>, vector<8x16xf32>
    tpu.vector_store %arg3[%c0_19, %c0_20], %29 {strides = array<i32>} : memref<8x16xf32, #tpu.memory_space<vmem>>, vector<8x16xf32>,
    return
  }
}

</mosaic_0001>

<bundles_post_ra>
// kernel: tpu_custom_call.1
= control target key start
LH: loop header
LB: loop body
LE: loop exit
PB: predicated region body
PF: predicated region fallthrough
CT: control target
= control target key end

     0   :  { %8 = vsyncpa [#allocation3], 0  ;;  %s659_s0 = inlined_call_operand.hbm [shape: f32[8,32], index: 0, kind: input, shape index: {}]   ;;  %s660_s1 = inlined_call_operand.hbm [shape: bf16[3,128,128], index: 1, kind: input, shape index: {}]   ;;  %s661_s2 = inlined_call_operand.vmem [shape: f32[3,1,128], index: 2, kind: input, shape index: {}]   ;;  %s662_s3 = inlined_call_operand.hbm [shape: f32[8,16], index: 3, kind: output, shape index: {}]  }
   0x1   :  { %9 = vsyncpa [#allocation6], 0 }
   0x2   :  { %10 = vsyncpa [#allocation4], 0  ;;  %s556_s12 = smov [#allocation2]   ;;  %s557_s14 = smov [#allocation5]  }
   0x3   :  { %s17_s13 = sshll.u32 %s556_s12, 4  ;;  %s26_s15 = sshll.u32 %s557_s14, 4  ;;  %s18_s13 = int_to_ptr.vmem [resolvable:$true] %s17_s13  ;;  %s583_s15 = int_to_ptr.vmem [resolvable:$true] %s26_s15 }
   0x4   :  { %s484_s18 = scalar_lea.hbm %s659_s0, 128 }
   0x5   :  { %p485_p0 = scmp.ne.s32.totalorder %s659_s0, %s484_s18  ;;  %p488_p1 = scmp.lt.u32.totalorder %s484_s18, %s659_s0 }
   0x7   :  { %p490_p2 = pnand %p488_p1, %p485_p0 }
   0x9   :  { %493 = shalt.err (!%p490_p2)
}
   0xa   :  { %s494_s23 = scalar_lea.vmem %s18_s13, 128  ;;  %p499_p4 = scmp.lt.s32.totalorder %s18_s13, %s18_s13 }
   0xb   :  { %p495_p3 = scmp.ne.s32.totalorder %s18_s13, %s494_s23  ;;  %p500_p5 = scmp.lt.s32.totalorder %s494_s23, %s494_s23 }
   0xd   :  { %p501_p6 = por %p500_p5, %p499_p4 }
   0xf   :  { %p502_p7 = pnand %p501_p6, %p495_p3 }
  0x11   :  { %505 = shalt.err (!%p502_p7)
}
  0x12   :  { %20 = dma.hbm_to_vmem [thread:$0]  %s659_s0, 128, %s18_s13, [#allocation3]  }
  0x13   :  { %s506_s28 = scalar_lea.hbm %s660_s1, 3072 }
  0x14   :  { %p507_p8 = scmp.ne.s32.totalorder %s660_s1, %s506_s28  ;;  %p510_p9 = scmp.lt.u32.totalorder %s506_s28, %s660_s1 }
  0x16   :  { %p512_p10 = pnand %p510_p9, %p507_p8 }
  0x18   :  { %515 = shalt.err (!%p512_p10)
}
  0x19   :  { %s516_s6 = scalar_lea.vmem %s583_s15, 3072  ;;  %p521_p12 = scmp.lt.s32.totalorder %s583_s15, %s583_s15 }
  0x1a   :  { %p517_p11 = scmp.ne.s32.totalorder %s583_s15, %s516_s6  ;;  %p522_p13 = scmp.lt.s32.totalorder %s516_s6, %s516_s6 }
  0x1c   :  { %p523_p0 = por %p522_p13, %p521_p12 }
  0x1e   :  { %p524_p1 = pnand %p523_p0, %p517_p11 }
  0x20   :  { %527 = shalt.err (!%p524_p1)
}
  0x21   :  { %s558_s0 = smov 64   ;;  %s559_s7 = smov 4  }
  0x22   :  { %32 = dma.hbm_to_vmem [thread:$0]  %s660_s1, 3072, %s583_s15, [#allocation6], %s558_s0, %s558_s0, %s559_s7  }
  0x23   :  { %550 = dma.done.wait [#allocation3], 128  }
  0x24   :  { %551 = vsyncadd [#allocation3], 4294967168 }
  0x25   :  { %552 = dma.done.wait [#allocation6], 3072  }
  0x26   :  { %553 = vsyncadd [#allocation6], 4294964224  ;;  %v560_v0 = vmov 0.0   ;;  %vm561_vm0 = vmmov 0   ;;  %v460_v1 = vld [vmem:[#allocation5] sm:$0xff]   ;;  %v461_v2 = vld [vmem:[#allocation5 + $0x8] sm:$0xff]  }
  0x27   :  { %405 = vmatprep.subr.bf16.mxu0 %v560_v0  ;;  %409 = vmatprep.mubr.msk.bf16.mxu0 %vm561_vm0, %v560_v0  ;;  %v42_v3 = vld [vmem:[#allocation2] sm:$0xff]  ;;  %v462_v4 = vld [vmem:[#allocation5 + $0x40] sm:$0xff]   ;;  %v463_v6 = vld [vmem:[#allocation5 + $0x48] sm:$0xff]   ;;  %vm67_vm1 = vcmask 261120   ;;  %s562_s15 = smov [#allocation7]   ;;  %vm342_vm2 = vcmask 130048  }
  0x28   :  { %413 = vmatprep.subr.bf16.mxu1 %v560_v0  ;;  %429 = vmatprep.mubr.msk.bf16.mxu1 %vm561_vm0, %v560_v0  ;;  %v43_v5 = vpack.c.bf16 %v42_v3, %v42_v3  ;;  %v464_v7 = vld [vmem:[#allocation5 + $0x50] sm:$0xff]   ;;  %v465_v8 = vld [vmem:[#allocation5 + $0x58] sm:$0xff]   ;;  %v466_v9 = vld [vmem:[#allocation5 + $0x60] sm:$0xff]   ;;  %s350_s16 = sshll.u32 %s562_s15, 4  ;;  %s351_s16 = int_to_ptr.vmem [resolvable:$true] %s350_s16 }
  0x29   :  { %406 = vmatpush3.bf16.msra.mxu0 %v460_v1  ;;  %414 = vmatpush3.bf16.msra.mxu1 %v462_v4  ;;  %v467_v10 = vld [vmem:[#allocation5 + $0x68] sm:$0xff]   ;;  %v468_v11 = vld [vmem:[#allocation5 + $0x70] sm:$0xff]   ;;  %v469_v12 = vld [vmem:[#allocation5 + $0x78] sm:$0xff]   ;;  %s528_s17 = scalar_lea.vmem %s351_s16, 128  ;;  %p533_p3 = scmp.lt.s32.totalorder %s351_s16, %s351_s16 }
  0x2a   :  { %407 = vmatprep.subr.bf16.mxu0 %v560_v0  ;;  %415 = vmatprep.subr.bf16.mxu1 %v560_v0  ;;  %v470_v13 = vld [vmem:[#allocation5 + $0x80] sm:$0xff]   ;;  %v471_v14 = vld [vmem:[#allocation5 + $0x88] sm:$0xff]   ;;  %v472_v15 = vld [vmem:[#allocation5 + $0x90] sm:$0xff]   ;;  %p529_p2 = scmp.ne.s32.totalorder %s351_s16, %s528_s17  ;;  %p534_p4 = scmp.lt.s32.totalorder %s528_s17, %s528_s17 }
  0x2b   :  { %v473_v16 = vld [vmem:[#allocation5 + $0x98] sm:$0xff]   ;;  %v474_v25 = vld [vmem:[#allocation5 + $0xa0] sm:$0xff]   ;;  %v475_v26 = vld [vmem:[#allocation5 + $0xa8] sm:$0xff]  }
  0x2c   :  { %v360_v17 = vld [vmem:[%s661_s2] ss:$0 sm:$0xff]  ;;  %v476_v27 = vld [vmem:[#allocation5 + $0xb0] sm:$0xff]   ;;  %v365_v29 = vld [vmem:[%s661_s2 + $0x1] ss:$0 sm:$0xff]  ;;  %p535_p5 = por %p534_p4, %p533_p3 }
  0x2d   :  { %408 = vmatpush3.bf16.msra.mxu0 %v461_v2  ;;  %416 = vmatpush3.bf16.msra.mxu1 %v463_v6  ;;  %v477_v28 = vld [vmem:[#allocation5 + $0xb8] sm:$0xff]  }
  0x2e   :  { %433 = vmatprep.subr.bf16.mxu0 %v560_v0  ;;  %417 = vmatprep.subr.bf16.mxu1 %v560_v0  ;;  %v375_v37 = vld [vmem:[%s661_s2 + $0x2] ss:$0 sm:$0xff]  ;;  %p536_p6 = pnand %p535_p5, %p529_p2 }
  0x30   :  { %410 = vmatmul.mubr.msk.bf16.vlgmr.msra.gmra.mrb[0].mxu0 %vm67_vm1, %v43_v5 }
  0x31   :  { %449 = vmatprep.mubr.msk.bf16.mxu0 %vm561_vm0, %v560_v0  ;;  %418 = vmatpush3.bf16.msra.mxu1 %v464_v7 }
  0x32   :  { %419 = vmatprep.subr.bf16.mxu1 %v560_v0  ;;  %434 = vmatpush3.bf16.msra.mxu0 %v470_v13 }
  0x33   :  { %435 = vmatprep.subr.bf16.mxu0 %v560_v0 }
  0x35   :  { %420 = vmatpush3.bf16.msra.mxu1 %v465_v8 }
  0x36   :  { %421 = vmatprep.subr.bf16.mxu1 %v560_v0  ;;  %436 = vmatpush3.bf16.msra.mxu0 %v471_v14 }
  0x37   :  { %437 = vmatprep.subr.bf16.mxu0 %v560_v0 }
  0x39   :  { %422 = vmatpush3.bf16.msra.mxu1 %v466_v9 }
  0x3a   :  { %423 = vmatprep.subr.bf16.mxu1 %v560_v0  ;;  %438 = vmatpush3.bf16.msra.mxu0 %v472_v15 }
  0x3b   :  { %439 = vmatprep.subr.bf16.mxu0 %v560_v0 }
  0x3d   :  { %424 = vmatpush3.bf16.msra.mxu1 %v467_v10 }
  0x3e   :  { %425 = vmatprep.subr.bf16.mxu1 %v560_v0  ;;  %440 = vmatpush3.bf16.msra.mxu0 %v473_v16 }
  0x3f   :  { %441 = vmatprep.subr.bf16.mxu0 %v560_v0 }
  0x41   :  { %426 = vmatpush3.bf16.msra.mxu1 %v468_v11 }
  0x42   :  { %427 = vmatprep.subr.bf16.mxu1 %v560_v0  ;;  %442 = vmatpush3.bf16.msra.mxu0 %v474_v25 }
  0x43   :  { %443 = vmatprep.subr.bf16.mxu0 %v560_v0 }
  0x45   :  { %428 = vmatpush3.bf16.msra.mxu1 %v469_v12 }
  0x46   :  { %444 = vmatpush3.bf16.msra.mxu0 %v475_v26 }
  0x47   :  { %445 = vmatprep.subr.bf16.mxu0 %v560_v0 }
  0x4a   :  { %446 = vmatpush3.bf16.msra.mxu0 %v476_v27 }
  0x4b   :  { %447 = vmatprep.subr.bf16.mxu0 %v560_v0 }
  0x4e   :  { %448 = vmatpush3.bf16.msra.mxu0 %v477_v28 }
 0x103   :  { %v105_v18 = vpop.f32.mrb[0].mxu0 }
 0x104   :  { %v106_v19 = vadd.f32 %v360_v17, %v105_v18  ;;  %v411_v20 = vpop.f32.mrb[1].mxu0 }
 0x105   :  { %v108_v21 = vpop.f32.mrb[2].mxu0 }
 0x106   :  { %478 = vtanh.f32 %v106_v19  ;;  %v412_v22 = vpop.f32.mrb[3].mxu0 }
 0x110   :  { %v479_v23 = vpop.eup %478 }
 0x111   :  { %v112_v24 = vpack.c.bf16 %v479_v23, %v479_v23 }
 0x113   :  { %430 = vmatmul.mubr.bf16.vlgmr.msra.gmra.mrb[0].mxu1 %v112_v24 }
 0x1e6   :  { %v220_v30 = vpop.f32.mrb[0].mxu1 }
 0x1e7   :  { %v221_v31 = vadd.f32 %v365_v29, %v220_v30  ;;  %v431_v32 = vpop.f32.mrb[1].mxu1 }
 0x1e8   :  { %v223_v33 = vpop.f32.mrb[2].mxu1 }
 0x1e9   :  { %480 = vtanh.f32 %v221_v31  ;;  %v432_v34 = vpop.f32.mrb[3].mxu1 }
 0x1f3   :  { %v481_v35 = vpop.eup %480 }
 0x1f4   :  { %v227_v36 = vpack.c.bf16 %v481_v35, %v481_v35 }
 0x1f6   :  { %450 = vmatmul.mubr.bf16.vlgmr.msra.gmra.mrb[4].mxu0 %v227_v36 }
 0x2c9   :  { %v335_v38 = vpop.f32.mrb[4].mxu0 }
 0x2ca   :  { %v336_v39 = vadd.f32 %v375_v37, %v335_v38  ;;  %v451_v40 = vpop.f32.mrb[5].mxu0 }
 0x2cb   :  { %v338_v41 = vpop.f32.mrb[6].mxu0 }
 0x2cc   :  { %482 = vtanh.f32 %v336_v39  ;;  %v452_v42 = vpop.f32.mrb[7].mxu0 }
 0x2d6   :  { %v483_v43 = vpop.eup %482 }
 0x2d7   :  { %343 = vst.msk [vmem:[#allocation7] sm:$0xff] %vm342_vm2, %v483_v43 }
 0x2d8   :  { %539 = shalt.err (!%p536_p6)
}
 0x2d9   :  { %s540_s19 = scalar_lea.hbm %s662_s3, 128 }
 0x2da   :  { %p541_p7 = scmp.ne.s32.totalorder %s662_s3, %s540_s19  ;;  %p544_p8 = scmp.lt.u32.totalorder %s540_s19, %s662_s3 }
 0x2dc   :  { %p546_p9 = pnand %p544_p8, %p541_p7 }
 0x2de   :  { %549 = shalt.err (!%p546_p9)
}
 0x2df   :  { %353 = dma.vmem_to_hbm [thread:$0]  %s351_s16, 128, %s662_s3, [#allocation4]  }
 0x2e0   :  { %554 = dma.done.wait [#allocation4], 128  }
 0x2e1   :  { %555 = vsyncadd [#allocation4], 4294967168 }
 0x2e2   :  { %357 = vsyncpa [#allocation3], 1 }
 0x2e3   :  { %358 = vsyncpa [#allocation6], 1 }
 0x2e4   :  { %359 = vsyncpa [#allocation4], 1 }

</bundles_post_ra>
